<compile_context>
chip_gen: v7x
topology: tpu7x:2x2x1
jax: 0.10.0
libtpu: 0.0.40
codegen_flags: <defaults>
</compile_context>

<pallas_src>
from typing import NamedTuple

import jax
import jax.numpy as jnp
from jax.experimental import pallas as pl
from jax.experimental.pallas import tpu as pltpu


# -------------------- kernels --------------------

def _fc_relu_kernel_f32(x_ref, w_ref, b_ref, o_ref):
    """f32 output: accumulate directly into the (resident) output tile."""
    k = pl.program_id(2)
    part = jnp.dot(x_ref[...], w_ref[...], preferred_element_type=jnp.float32)

    @pl.when(k == 0)
    def _():
        o_ref[...] = part

    @pl.when(k != 0)
    def _():
        o_ref[...] += part

    @pl.when(k == pl.num_programs(2) - 1)
    def _():
        o_ref[...] = jnp.maximum(o_ref[...] + b_ref[...], 0.0)


def _fc_relu_kernel_acc(x_ref, w_ref, b_ref, o_ref, acc_ref):
    """Non-f32 output (e.g. bf16): keep an f32 VMEM accumulator."""
    k = pl.program_id(2)
    part = jnp.dot(x_ref[...], w_ref[...], preferred_element_type=jnp.float32)

    @pl.when(k == 0)
    def _():
        acc_ref[...] = part

    @pl.when(k != 0)
    def _():
        acc_ref[...] += part

    @pl.when(k == pl.num_programs(2) - 1)
    def _():
        o_ref[...] = jnp.maximum(acc_ref[...] + b_ref[...], 0.0).astype(o_ref.dtype)


# -------------------- helpers --------------------

def _round_up(x, m):
    return ((x + m - 1) // m) * m


_TM_CAP = 512    # batch tile cap (sublane axis, multiple of 8)
_TN_CAP = 512    # output-feature tile cap (lane axis, multiple of 128)
_TK_CAP = 2048   # reduction tile cap (multiple of 128); K collapses when it fits


def _vmem_limit_bytes():
    """Generation-aware VMEM cap (~3/4 of physical, bounded for safety)."""
    cap = 64 * 1024 * 1024
    try:
        info = pltpu.get_tpu_info()
        cap = int(getattr(info, "vmem_capacity_bytes", cap))
    except Exception:  # query unavailable -> conservative default (fits v7x)
        pass
    return max(32 * 1024 * 1024, min((cap * 3) // 4, 100 * 1024 * 1024))


class FCParams(NamedTuple):
    w_t: jax.Array      # [Kp, Np]  weight.T, zero-padded (one-time prep)
    b2d: jax.Array      # [1,  Np]  bias, zero-padded
    in_features: int
    out_features: int
    tn: int
    tk: int


def prepare_fc_params(weight, bias):
    """One-time parameter prep: transpose + pad the PyTorch-layout weight/bias."""
    out_f, in_f = weight.shape
    assert bias.shape == (out_f,)

    tn = min(_round_up(out_f, 128), _TN_CAP)
    tk = min(_round_up(in_f, 128), _TK_CAP)
    Np = _round_up(out_f, tn)
    Kp = _round_up(in_f, tk)

    w_t = jnp.zeros((Kp, Np), weight.dtype).at[:in_f, :out_f].set(weight.T)
    b2d = jnp.zeros((1, Np), bias.dtype).at[0, :out_f].set(bias)
    return FCParams(w_t=w_t, b2d=b2d, in_features=in_f, out_features=out_f,
                    tn=tn, tk=tk)


def fc_forward(x, params: FCParams):
    """relu(x @ weight.T + bias), matching nn.Sequential(nn.Linear, nn.ReLU)."""
    B, in_f = x.shape
    assert in_f == params.in_features, "in_features mismatch"
    Kp, Np = params.w_t.shape
    tn, tk = params.tn, params.tk

    # Size tm to the batch so the M grid extent is 1 for typical batches and
    # the weight streams from HBM exactly once.
    tm = min(_round_up(B, 8), _TM_CAP)
    Bp = _round_up(B, tm)

    # Only the (small) activation is padded per call.
    if (Bp, Kp) != (B, in_f):
        x_p = jnp.zeros((Bp, Kp), x.dtype).at[:B, :in_f].set(x)
    else:
        x_p = x

    grid = (Bp // tm, Np // tn, Kp // tk)   # reduction axis last

    out_dtype = x.dtype
    use_acc = out_dtype != jnp.float32
    kernel = _fc_relu_kernel_acc if use_acc else _fc_relu_kernel_f32
    scratch = [pltpu.VMEM((tm, tn), jnp.float32)] if use_acc else []

    itemsize = jnp.dtype(out_dtype).itemsize
    cost = pl.CostEstimate(
        flops=2 * Bp * Kp * Np,
        transcendentals=0,
        bytes_accessed=(x_p.size * jnp.dtype(x_p.dtype).itemsize
                        + params.w_t.size * jnp.dtype(params.w_t.dtype).itemsize
                        + Bp * Np * itemsize),
    )

    out = pl.pallas_call(
        kernel,
        out_shape=jax.ShapeDtypeStruct((Bp, Np), out_dtype),
        grid=grid,
        in_specs=[
            pl.BlockSpec((tm, tk), lambda i, j, k: (i, k)),   # x [B, in]
            pl.BlockSpec((tk, tn), lambda i, j, k: (k, j)),   # w [in, out] (pre-T)
            pl.BlockSpec((1, tn), lambda i, j, k: (0, j)),    # bias
        ],
        out_specs=pl.BlockSpec((tm, tn), lambda i, j, k: (i, j)),
        scratch_shapes=scratch,
        compiler_params=pltpu.CompilerParams(
            dimension_semantics=("parallel", "parallel", "arbitrary"),
            vmem_limit_bytes=_vmem_limit_bytes(),
        ),
        cost_estimate=cost,
    )(x_p, params.w_t, params.b2d)

    if Bp != B or Np != params.out_features:
        out = out[:B, :params.out_features]
    return out


if __name__ == "__main__":
    # Small shapes consistent with an FC layer: batch=16, in=32, out=64.
    B, IN_F, OUT_F = 16, 32, 64

    key = jax.random.PRNGKey(0)
    kx, kw, kb = jax.random.split(key, 3)

    x = jax.random.normal(kx, (B, IN_F), dtype=jnp.float32)
    # PyTorch Linear layout: weight [out_features, in_features], bias [out_features].
    weight = jax.random.normal(kw, (OUT_F, IN_F), dtype=jnp.float32) * 0.1
    bias = jax.random.normal(kb, (OUT_F,), dtype=jnp.float32) * 0.1

    params = prepare_fc_params(weight, bias)   # one-time transpose/pad of W, b
    out = jax.block_until_ready(fc_forward(x, params))

    # Pure-JAX reference check.
    ref = jnp.maximum(x @ weight.T + bias, 0.0)
    assert out.shape == (B, OUT_F)
    assert jnp.allclose(out, ref, atol=1e-5, rtol=1e-5)

    print("KERNEL_OK")
</pallas_src>

<mosaic_0001>
module attributes {stable_mosaic.version = 11 : i64} {
  func.func @_fc_relu_kernel_f32(%arg0: i32, %arg1: i32, %arg2: i32, %arg3: memref<16x128xf32, #tpu.memory_space<vmem>>, %arg4: memref<128x128xf32, #tpu.memory_space<vmem>>, %arg5: memref<1x128xf32, #tpu.memory_space<vmem>>, %arg6: memref<16x128xf32, #tpu.memory_space<vmem>>) attributes {dimension_semantics = [#tpu.dimension_semantics<parallel>, #tpu.dimension_semantics<parallel>, #tpu.dimension_semantics<arbitrary>], iteration_bounds = array<i64: 1, 1, 1>, scalar_prefetch = 0 : i64, scratch_operands = 0 : i64, tpu.core_type = #tpu.core_type<tc>, window_params = [{transform_indices = @transform_0, window_bounds = array<i64: 16, 128>}, {transform_indices = @transform_1, window_bounds = array<i64: 128, 128>}, {transform_indices = @transform_2, window_bounds = array<i64: 1, 128>}, {transform_indices = @transform_3, window_bounds = array<i64: 16, 128>}]} {
    %c0 = arith.constant 0 : index
    %c0_0 = arith.constant 0 : index
    %0 = vector.load %arg3[%c0, %c0_0] : memref<16x128xf32, #tpu.memory_space<vmem>>, vector<16x128xf32>
    %c0_1 = arith.constant 0 : index
    %c0_2 = arith.constant 0 : index
    %1 = vector.load %arg4[%c0_1, %c0_2] : memref<128x128xf32, #tpu.memory_space<vmem>>, vector<128x128xf32>
    %cst = arith.constant dense<0.000000e+00> : vector<16x128xf32>
    %2 = tpu.matmul %0, %1, %cst {dimension_numbers = #tpu.dot_dimension_numbers<[1], [0], [0], [1], [0, 0, 1, 1], [], []>} : vector<16x128xf32>, vector<128x128xf32>, vector<16x128xf32> -> vector<16x128xf32>
    %c0_i32 = arith.constant 0 : i32
    %3 = arith.cmpi eq, %arg2, %c0_i32 : i32
    %4 = arith.extui %3 : i1 to i32
    %c0_i32_3 = arith.constant 0 : i32
    %5 = arith.cmpi ne, %4, %c0_i32_3 : i32
    scf.if %5 {
      %c0_8 = arith.constant 0 : index
      %c0_9 = arith.constant 0 : index
      %12 = vector.load %arg6[%c0_8, %c0_9] : memref<16x128xf32, #tpu.memory_space<vmem>>, vector<16x128xf32>
      tpu.vector_store %arg6[%c0_8, %c0_9], %2 {strides = array<i32>} : memref<16x128xf32, #tpu.memory_space<vmem>>, vector<16x128xf32>,
    } else {
    }
    %c0_i32_4 = arith.constant 0 : i32
    %6 = arith.cmpi ne, %arg2, %c0_i32_4 : i32
    %7 = arith.extui %6 : i1 to i32
    %c0_i32_5 = arith.constant 0 : i32
    %8 = arith.cmpi ne, %7, %c0_i32_5 : i32
    scf.if %8 {
      %c0_8 = arith.constant 0 : index
      %c0_9 = arith.constant 0 : index
      %12 = vector.load %arg6[%c0_8, %c0_9] : memref<16x128xf32, #tpu.memory_space<vmem>>, vector<16x128xf32>
      %13 = arith.addf %12, %2 : vector<16x128xf32>
      %c0_10 = arith.constant 0 : index
      %c0_11 = arith.constant 0 : index
      %14 = vector.load %arg6[%c0_10, %c0_11] : memref<16x128xf32, #tpu.memory_space<vmem>>, vector<16x128xf32>
      tpu.vector_store %arg6[%c0_10, %c0_11], %13 {strides = array<i32>} : memref<16x128xf32, #tpu.memory_space<vmem>>, vector<16x128xf32>,
    } else {
    }
    %c0_i32_6 = arith.constant 0 : i32
    %9 = arith.cmpi eq, %arg2, %c0_i32_6 : i32
    %10 = arith.extui %9 : i1 to i32
    %c0_i32_7 = arith.constant 0 : i32
    %11 = arith.cmpi ne, %10, %c0_i32_7 : i32
    scf.if %11 {
      %c0_8 = arith.constant 0 : index
      %c0_9 = arith.constant 0 : index
      %12 = vector.load %arg6[%c0_8, %c0_9] : memref<16x128xf32, #tpu.memory_space<vmem>>, vector<16x128xf32>
      %c0_10 = arith.constant 0 : index
      %c0_11 = arith.constant 0 : index
      %13 = vector.load %arg5[%c0_10, %c0_11] : memref<1x128xf32, #tpu.memory_space<vmem>>, vector<1x128xf32>
      %14 = vector.broadcast %13 : vector<1x128xf32> to vector<16x128xf32>
      %15 = arith.addf %12, %14 : vector<16x128xf32>
      %cst_12 = arith.constant 0.000000e+00 : f32
      %16 = vector.broadcast %cst_12 : f32 to vector<16x128xf32>
      %17 = arith.maximumf %15, %16 : vector<16x128xf32>
      %c0_13 = arith.constant 0 : index
      %c0_14 = arith.constant 0 : index
      %18 = vector.load %arg6[%c0_13, %c0_14] : memref<16x128xf32, #tpu.memory_space<vmem>>, vector<16x128xf32>
      tpu.vector_store %arg6[%c0_13, %c0_14], %17 {strides = array<i32>} : memref<16x128xf32, #tpu.memory_space<vmem>>, vector<16x128xf32>,
    } else {
    }
    return
  }
  func.func @transform_0(%arg0: i32, %arg1: i32, %arg2: i32) -> (i32, i32) {
    %c0_i32 = arith.constant 0 : i32
    return %arg0, %arg2 : i32, i32
  }
  func.func @transform_1(%arg0: i32, %arg1: i32, %arg2: i32) -> (i32, i32) {
    %c0_i32 = arith.constant 0 : i32
    return %arg2, %arg1 : i32, i32
  }
  func.func @transform_2(%arg0: i32, %arg1: i32, %arg2: i32) -> (i32, i32) {
    %c0_i32 = arith.constant 0 : i32
    %c0_i32_0 = arith.constant 0 : i32
    return %c0_i32, %arg1 : i32, i32
  }
  func.func @transform_3(%arg0: i32, %arg1: i32, %arg2: i32) -> (i32, i32) {
    %c0_i32 = arith.constant 0 : i32
    return %arg0, %arg1 : i32, i32
  }
}

</mosaic_0001>

<bundles_post_ra>
// kernel: tpu_custom_call.1
= control target key start
LH: loop header
LB: loop body
LE: loop exit
PB: predicated region body
PF: predicated region fallthrough
CT: control target
= control target key end

     0   :  { %8 = vsyncpa [#allocation3], 0  ;;  %s424_s0 = inlined_call_operand.hbm [shape: f32[16,128], index: 0, kind: input, shape index: {}]   ;;  %s425_s1 = inlined_call_operand.hbm [shape: f32[128,128], index: 1, kind: input, shape index: {}]   ;;  %s426_s2 = inlined_call_operand.vmem [shape: f32[1,128], index: 2, kind: input, shape index: {}]   ;;  %s427_s3 = inlined_call_operand.hbm [shape: f32[16,128], index: 3, kind: output, shape index: {}]  }
   0x1   :  { %9 = vsyncpa [#allocation6], 0 }
   0x2   :  { %10 = vsyncpa [#allocation4], 0  ;;  %s351_s12 = smov [#allocation2]   ;;  %s279_s16 = scalar_lea.hbm %s424_s0, 256 }
   0x3   :  { %s16_s13 = sshll.u32 %s351_s12, 4  ;;  %p280_p0 = scmp.ne.s32.totalorder %s424_s0, %s279_s16  ;;  %s17_s13 = int_to_ptr.vmem [resolvable:$true] %s16_s13 }
   0x4   :  { %p283_p1 = scmp.lt.u32.totalorder %s279_s16, %s424_s0 }
   0x6   :  { %p285_p2 = pnand %p283_p1, %p280_p0 }
   0x8   :  { %288 = shalt.err (!%p285_p2)
}
   0x9   :  { %s289_s21 = scalar_lea.vmem %s17_s13, 256  ;;  %p294_p4 = scmp.lt.s32.totalorder %s17_s13, %s17_s13 }
   0xa   :  { %p290_p3 = scmp.ne.s32.totalorder %s17_s13, %s289_s21  ;;  %p295_p5 = scmp.lt.s32.totalorder %s289_s21, %s289_s21 }
   0xc   :  { %p296_p6 = por %p295_p5, %p294_p4 }
   0xe   :  { %p297_p7 = pnand %p296_p6, %p290_p3 }
  0x10   :  { %300 = shalt.err (!%p297_p7)
}
  0x11   :  { %s352_s22 = smov 128   ;;  %s353_s23 = smov 8  }
  0x12   :  { %22 = dma.hbm_to_vmem [thread:$0]  %s424_s0, 256, %s17_s13, [#allocation3], %s352_s22, %s352_s22, %s353_s23  }
  0x13   :  { %s354_s26 = smov [#allocation5]   ;;  %s301_s30 = scalar_lea.hbm %s425_s1, 2048 }
  0x14   :  { %s28_s27 = sshll.u32 %s354_s26, 4  ;;  %p302_p8 = scmp.ne.s32.totalorder %s425_s1, %s301_s30  ;;  %s29_s27 = int_to_ptr.vmem [resolvable:$true] %s28_s27 }
  0x15   :  { %p305_p9 = scmp.lt.u32.totalorder %s301_s30, %s425_s1 }
  0x17   :  { %p307_p10 = pnand %p305_p9, %p302_p8 }
  0x19   :  { %310 = shalt.err (!%p307_p10)
}
  0x1a   :  { %s311_s8 = scalar_lea.vmem %s29_s27, 2048  ;;  %p316_p12 = scmp.lt.s32.totalorder %s29_s27, %s29_s27 }
  0x1b   :  { %p312_p11 = scmp.ne.s32.totalorder %s29_s27, %s311_s8  ;;  %p317_p13 = scmp.lt.s32.totalorder %s311_s8, %s311_s8 }
  0x1d   :  { %p318_p0 = por %p317_p13, %p316_p12 }
  0x1f   :  { %p319_p1 = pnand %p318_p0, %p312_p11 }
  0x21   :  { %322 = shalt.err (!%p319_p1)
}
  0x22   :  { %34 = dma.hbm_to_vmem [thread:$0]  %s425_s1, 2048, %s29_s27, [#allocation6], %s352_s22, %s352_s22, %s353_s23  }
  0x23   :  { %345 = dma.done.wait [#allocation3], 256  }
  0x24   :  { %346 = vsyncadd [#allocation3], 4294967040 }
  0x25   :  { %347 = dma.done.wait [#allocation6], 2048  }
  0x26   :  { %348 = vsyncadd [#allocation6], 4294965248  ;;  %v45_v0 = vld [vmem:[#allocation5] sm:$0xff]  ;;  %v46_v1 = vld [vmem:[#allocation5 + $0x8] sm:$0xff]  ;;  %s355_s11 = smov [#allocation7]  }
  0x27   :  { %v47_v2 = vld [vmem:[#allocation5 + $0x10] sm:$0xff]  ;;  %v242_v3 = vpack.c.bf16 %v46_v1, %v45_v0  ;;  %v48_v4 = vld [vmem:[#allocation5 + $0x18] sm:$0xff]  ;;  %v49_v6 = vld [vmem:[#allocation5 + $0x20] sm:$0xff]  ;;  %s175_s12 = sshll.u32 %s355_s11, 4  ;;  %s176_s12 = int_to_ptr.vmem [resolvable:$true] %s175_s12 }
  0x28   :  { %v246_v5 = vpack.c.bf16 %v48_v4, %v47_v2  ;;  %v50_v7 = vld [vmem:[#allocation5 + $0x28] sm:$0xff]  ;;  %v43_v9 = vld [vmem:[#allocation2] sm:$0xff]  ;;  %v52_v11 = vld [vmem:[#allocation5 + $0x38] sm:$0xff]  ;;  %s323_s13 = scalar_lea.vmem %s176_s12, 256  ;;  %p328_p3 = scmp.lt.s32.totalorder %s176_s12, %s176_s12 }
  0x29   :  { %243 = vmatprep.subr.bf16.mxu0 %v242_v3  ;;  %v250_v8 = vpack.c.bf16 %v50_v7, %v49_v6  ;;  %v51_v10 = vld [vmem:[#allocation5 + $0x30] sm:$0xff]  ;;  %239 = vmatprep.mubr.f32.mxu0 %v43_v9  ;;  %v53_v13 = vld [vmem:[#allocation5 + $0x40] sm:$0xff]  ;;  %v54_v14 = vld [vmem:[#allocation5 + $0x48] sm:$0xff]  ;;  %p324_p2 = scmp.ne.s32.totalorder %s176_s12, %s323_s13  ;;  %p329_p4 = scmp.lt.s32.totalorder %s323_s13, %s323_s13 }
  0x2a   :  { %245 = vmatpush3.bf16.msra.mxu0 %v242_v3  ;;  %v254_v12 = vpack.c.bf16 %v52_v11, %v51_v10  ;;  %v258_v15 = vpack.c.bf16 %v54_v14, %v53_v13  ;;  %v55_v16 = vld [vmem:[#allocation5 + $0x50] sm:$0xff]  ;;  %v56_v17 = vld [vmem:[#allocation5 + $0x58] sm:$0xff]  ;;  %v57_v19 = vld [vmem:[#allocation5 + $0x60] sm:$0xff] }
  0x2b   :  { %247 = vmatprep.subr.bf16.mxu0 %v246_v5  ;;  %v262_v18 = vpack.c.bf16 %v56_v17, %v55_v16  ;;  %v58_v20 = vld [vmem:[#allocation5 + $0x68] sm:$0xff]  ;;  %v59_v22 = vld [vmem:[#allocation5 + $0x70] sm:$0xff]  ;;  %v60_v23 = vld [vmem:[#allocation5 + $0x78] sm:$0xff]  ;;  %p330_p5 = por %p329_p4, %p328_p3 }
  0x2c   :  { %v266_v21 = vpack.c.bf16 %v58_v20, %v57_v19  ;;  %v270_v24 = vpack.c.bf16 %v60_v23, %v59_v22  ;;  %v44_v25 = vld [vmem:[#allocation2 + $0x8] sm:$0xff]  ;;  %v188_v26 = vld [vmem:[%s426_s2] ss:$0 sm:$0xff] }
  0x2d   :  { %p331_p6 = pnand %p330_p5, %p324_p2 }
  0x2e   :  { %249 = vmatpush3.bf16.msra.mxu0 %v246_v5 }
  0x2f   :  { %251 = vmatprep.subr.bf16.mxu0 %v250_v8 }
  0x32   :  { %253 = vmatpush3.bf16.msra.mxu0 %v250_v8 }
  0x33   :  { %255 = vmatprep.subr.bf16.mxu0 %v254_v12 }
  0x36   :  { %257 = vmatpush3.bf16.msra.mxu0 %v254_v12 }
  0x37   :  { %259 = vmatprep.subr.bf16.mxu0 %v258_v15 }
  0x3a   :  { %261 = vmatpush3.bf16.msra.mxu0 %v258_v15 }
  0x3b   :  { %263 = vmatprep.subr.bf16.mxu0 %v262_v18 }
  0x3e   :  { %265 = vmatpush3.bf16.msra.mxu0 %v262_v18 }
  0x3f   :  { %267 = vmatprep.subr.bf16.mxu0 %v266_v21 }
  0x42   :  { %269 = vmatpush3.bf16.msra.mxu0 %v266_v21 }
  0x43   :  { %271 = vmatprep.subr.bf16.mxu0 %v270_v24 }
  0x46   :  { %273 = vmatpush3.bf16.msra.mxu0 %v270_v24 }
  0x49   :  { %240 = vmatmul.mubr.f32.vlgmr.msra.gmra.mrb[0].mxu0 %v44_v25 }
 0x11c   :  { %v241_v27 = vpop.f32.mrb[0].mxu0 }
 0x11d   :  { %v127_v28 = vpop.f32.mrb[1].mxu0  ;;  %v165_v29 = vadd.f32 %v241_v27, %v188_v26 }
 0x11e   :  { %v164_v30 = vadd.f32 %v188_v26, %v127_v28 }
 0x11f   :  { %v167_v31 = vmax.f32 %v165_v29, 0.0 }
 0x120   :  { %v166_v32 = vmax.f32 %v164_v30, 0.0 }
 0x121   :  { %169 = vst [vmem:[#allocation7 + $0x8] sm:$0xff] %v167_v31 }
 0x122   :  { %168 = vst [vmem:[#allocation7] sm:$0xff] %v166_v32 }
 0x123   :  { %334 = shalt.err (!%p331_p6)
}
 0x124   :  { %s335_s15 = scalar_lea.hbm %s427_s3, 256 }
 0x125   :  { %p336_p7 = scmp.ne.s32.totalorder %s427_s3, %s335_s15  ;;  %p339_p8 = scmp.lt.u32.totalorder %s335_s15, %s427_s3 }
 0x127   :  { %p341_p9 = pnand %p339_p8, %p336_p7 }
 0x129   :  { %344 = shalt.err (!%p341_p9)
}
 0x12a   :  { %181 = dma.vmem_to_hbm [thread:$0]  %s176_s12, 256, %s427_s3, [#allocation4], %s352_s22, %s352_s22, %s353_s23  }
 0x12b   :  { %349 = dma.done.wait [#allocation4], 256  }
 0x12c   :  { %350 = vsyncadd [#allocation4], 4294967040 }
 0x12d   :  { %185 = vsyncpa [#allocation3], 1 }
 0x12e   :  { %186 = vsyncpa [#allocation6], 1 }
 0x12f   :  { %187 = vsyncpa [#allocation4], 1 }

</bundles_post_ra>
